<compile_context>
chip_gen: v5e
topology: v5e:2x2
jax: 0.10.0
libtpu: 0.0.40
codegen_flags: <defaults>
</compile_context>

<pallas_src>
import functools

import jax
import jax.numpy as jnp
from jax.experimental import pallas as pl
from jax.experimental.pallas import tpu as pltpu

EMBED_SIZE = 512
LN_EPS = 1e-5


def ffn_kernel(x_ref, w1_ref, b1_ref, w2_ref, p_ref, o_ref):
    # Keep the native-dtype tile for the MXU path; promote to f32 only for the
    # residual / LayerNorm path (no-op when x is already f32).
    x_in = x_ref[...]                                       # (TM, E)
    x = x_in.astype(jnp.float32)

    # Linear(E -> d) + ReLU.  bf16 MXU inputs, f32 accumulation.
    h = jnp.dot(x_in.astype(jnp.bfloat16), w1_ref[...],
                preferred_element_type=jnp.float32)         # (TM, d)
    h = h + b1_ref[...]                                     # (1, d) broadcasts
    h = jnp.maximum(h, 0.0)

    # Linear(d -> E).  bf16 MXU inputs, f32 accumulation.
    z = jnp.dot(h.astype(jnp.bfloat16), w2_ref[...],
                preferred_element_type=jnp.float32)         # (TM, E)
    z = z + p_ref[0:1, :]                                   # b2

    # Dropout (eval mode: identity) + residual.
    y = x + z                                               # (TM, E)

    # LayerNorm over last axis (population variance, like torch.nn.LayerNorm).
    # Ragged last grid block: rows past n_rows hold garbage (possibly NaN) but
    # are never written back (masked partial store), so this stays correct.
    mean = jnp.mean(y, axis=-1, keepdims=True)
    centered = y - mean
    var = jnp.mean(centered * centered, axis=-1, keepdims=True)
    inv = jax.lax.rsqrt(var + LN_EPS)
    out = centered * inv * p_ref[1:2, :] + p_ref[2:3, :]    # gamma, beta

    o_ref[...] = out.astype(o_ref.dtype)


def prepare_ffn_params(w1, b1, w2, b2, gamma, beta):
    """One-time parameter packing (do this at load time, NOT per forward call).

    Returns (w1_bf16, b1_2d_f32, w2_bf16, packed_f32) where packed stacks
    b2/gamma/beta into a single (3, EMBED) operand to cut resident-param DMA
    streams.
    """
    d = w1.shape[1]
    w1b = w1.astype(jnp.bfloat16)                           # (E, d)
    w2b = w2.astype(jnp.bfloat16)                           # (d, E)
    b1_2d = b1.reshape(1, d).astype(jnp.float32)            # (1, d)
    packed = jnp.stack([b2, gamma, beta]).astype(jnp.float32)  # (3, E)
    return w1b, b1_2d, w2b, packed


def _default_row_tile():
    # 512-row tiles reach ~85% of HBM roofline on v5e/v6e (measured sweep);
    # v7x's ~3.2 TB/s HBM wants a larger tile to amortize per-step overhead.
    try:
        kind = jax.devices()[0].device_kind.lower()
    except Exception:
        kind = ""
    if "v7" in kind or "7x" in kind:
        return 1024
    return 512


@functools.partial(jax.jit, static_argnames=("tm", "out_dtype"))
def _ffn_forward_impl(x, w1b, b1_2d, w2b, packed, *, tm, out_dtype):
    batch, seq, embed = x.shape
    assert embed == EMBED_SIZE
    n_rows = batch * seq
    d = w1b.shape[1]

    # Effective row tile: multiple of 8 (sublane), no bigger than needed.
    tm_eff = max(8, min(tm, pl.cdiv(n_rows, 8) * 8))
    # Guarantee >= 2 grid steps when possible so the "parallel" axis can be
    # sharded across both TensorCores on v7x (harmless on 1-TC v5e/v6e).
    if n_rows >= 16:
        half_rows = pl.cdiv(pl.cdiv(n_rows, 2), 8) * 8
        tm_eff = min(tm_eff, half_rows)
    tm_eff = pl.cdiv(tm_eff, 8) * 8

    # No padding: the grid covers n_rows with a possibly-ragged last block;
    # Pallas masks the partial write of that block.
    grid = (pl.cdiv(n_rows, tm_eff),)
    x2d = x.reshape(n_rows, embed)

    # Explicit scoped-VMEM limit only when the tile grows past the v6e/v7x
    # default sweet spot (x/out double buffers + f32 LN intermediates).
    vmem_limit = 48 * 1024 * 1024 if tm_eff > 512 else None

    # NOTE: the four constant-index operands (w1/b1/w2/packed) could be marked
    # pipeline_mode=pl.Buffered(1) to reclaim their second VMEM buffer; the
    # saving is negligible at these sizes so the portable default is kept.
    out2d = pl.pallas_call(
        ffn_kernel,
        out_shape=jax.ShapeDtypeStruct((n_rows, embed), out_dtype),
        grid_spec=pltpu.PrefetchScalarGridSpec(
            num_scalar_prefetch=0,
            grid=grid,
            in_specs=[
                pl.BlockSpec((tm_eff, embed), lambda i: (i, 0)),  # x rows
                pl.BlockSpec((embed, d), lambda i: (0, 0)),       # w1 (bf16)
                pl.BlockSpec((1, d), lambda i: (0, 0)),           # b1
                pl.BlockSpec((d, embed), lambda i: (0, 0)),       # w2 (bf16)
                pl.BlockSpec((3, embed), lambda i: (0, 0)),       # b2/gamma/beta
            ],
            out_specs=pl.BlockSpec((tm_eff, embed), lambda i: (i, 0)),
        ),
        compiler_params=pltpu.CompilerParams(
            dimension_semantics=("parallel",),
            vmem_limit_bytes=vmem_limit),
    )(x2d, w1b, b1_2d, w2b, packed)

    return out2d.reshape(batch, seq, embed)


def ffn_forward(x, w1b, b1_2d, w2b, packed, *, tm=None, out_dtype=None):
    """x: [batch, seq, EMBED_SIZE] -> same shape (dtype = out_dtype or x.dtype).

    Takes pre-packed parameters from prepare_ffn_params().  tm is the row
    tile (defaults per TPU generation); out_dtype=jnp.bfloat16 halves the
    streamed output bytes if the surrounding model runs in bf16.
    """
    if tm is None:
        tm = _default_row_tile()
    if out_dtype is None:
        out_dtype = x.dtype
    return _ffn_forward_impl(x, w1b, b1_2d, w2b, packed,
                             tm=int(tm), out_dtype=jnp.dtype(out_dtype))


def reference_forward(x, w1, b1, w2, b2, gamma, beta):
    """Pure-JAX f32 reference matching the PyTorch module in eval mode."""
    h = jnp.maximum(x @ w1 + b1, 0.0)
    z = h @ w2 + b2
    y = x + z
    mean = jnp.mean(y, axis=-1, keepdims=True)
    var = jnp.mean((y - mean) ** 2, axis=-1, keepdims=True)
    return (y - mean) / jnp.sqrt(var + LN_EPS) * gamma + beta


if __name__ == "__main__":
    key = jax.random.PRNGKey(0)
    k_x, k_w1, k_b1, k_w2, k_b2 = jax.random.split(key, 5)

    batch, seq = 2, 8          # small; EMBED_SIZE=512 is fixed by the module
    d = 128                    # hidden width of the FFN

    x = jax.random.normal(k_x, (batch, seq, EMBED_SIZE), dtype=jnp.float32)

    # Deterministic synthetic parameters (uniform fan-in init, like nn.Linear).
    lim1 = 1.0 / (EMBED_SIZE ** 0.5)
    lim2 = 1.0 / (d ** 0.5)
    w1 = jax.random.uniform(k_w1, (EMBED_SIZE, d), jnp.float32, -lim1, lim1)
    b1 = jax.random.uniform(k_b1, (d,), jnp.float32, -lim1, lim1)
    w2 = jax.random.uniform(k_w2, (d, EMBED_SIZE), jnp.float32, -lim2, lim2)
    b2 = jax.random.uniform(k_b2, (EMBED_SIZE,), jnp.float32, -lim2, lim2)
    gamma = jnp.ones((EMBED_SIZE,), jnp.float32)
    beta = jnp.zeros((EMBED_SIZE,), jnp.float32)

    # One-time parameter packing (kept out of the per-call path).
    w1b, b1_2d, w2b, packed = prepare_ffn_params(w1, b1, w2, b2, gamma, beta)

    out = ffn_forward(x, w1b, b1_2d, w2b, packed)
    out = jax.block_until_ready(out)

    ref = reference_forward(x, w1, b1, w2, b2, gamma, beta)
    assert out.shape == (batch, seq, EMBED_SIZE)
    # bf16 MXU inputs (f32 accumulation) -> tolerance loosened vs. pure f32.
    assert jnp.allclose(out, ref, atol=2e-2, rtol=2e-2), "mismatch vs reference"

    print("KERNEL_OK")
</pallas_src>

<mosaic_0001>
module attributes {stable_mosaic.version = 11 : i64} {
  func.func @ffn_kernel(%arg0: i32, %arg1: memref<8x512xf32, #tpu.memory_space<vmem>>, %arg2: memref<512x128xbf16, #tpu.memory_space<vmem>>, %arg3: memref<1x128xf32, #tpu.memory_space<vmem>>, %arg4: memref<128x512xbf16, #tpu.memory_space<vmem>>, %arg5: memref<3x512xf32, #tpu.memory_space<vmem>>, %arg6: memref<8x512xf32, #tpu.memory_space<vmem>>) attributes {dimension_semantics = [#tpu.dimension_semantics<parallel>], iteration_bounds = array<i64: 2>, scalar_prefetch = 0 : i64, scratch_operands = 0 : i64, tpu.core_type = #tpu.core_type<tc>, window_params = [{transform_indices = @transform_0, window_bounds = array<i64: 8, 512>}, {pipeline_mode = #tpu.pipeline_mode<synchronous>, transform_indices = @transform_1, window_bounds = array<i64: 512, 128>}, {pipeline_mode = #tpu.pipeline_mode<synchronous>, transform_indices = @transform_2, window_bounds = array<i64: 1, 128>}, {pipeline_mode = #tpu.pipeline_mode<synchronous>, transform_indices = @transform_3, window_bounds = array<i64: 128, 512>}, {pipeline_mode = #tpu.pipeline_mode<synchronous>, transform_indices = @transform_4, window_bounds = array<i64: 3, 512>}, {transform_indices = @transform_5, window_bounds = array<i64: 8, 512>}]} {
    %c0 = arith.constant 0 : index
    %c0_0 = arith.constant 0 : index
    %0 = vector.load %arg1[%c0, %c0_0] : memref<8x512xf32, #tpu.memory_space<vmem>>, vector<8x512xf32>
    %1 = arith.truncf %0 : vector<8x512xf32> to vector<8x512xbf16>
    %c0_1 = arith.constant 0 : index
    %c0_2 = arith.constant 0 : index
    %2 = vector.load %arg2[%c0_1, %c0_2] : memref<512x128xbf16, #tpu.memory_space<vmem>>, vector<512x128xbf16>
    %cst = arith.constant dense<0.000000e+00> : vector<8x128xf32>
    %3 = tpu.matmul %1, %2, %cst {dimension_numbers = #tpu.dot_dimension_numbers<[1], [0], [0], [1], [0, 0, 1, 1], [], []>} : vector<8x512xbf16>, vector<512x128xbf16>, vector<8x128xf32> -> vector<8x128xf32>
    %c0_3 = arith.constant 0 : index
    %c0_4 = arith.constant 0 : index
    %4 = vector.load %arg3[%c0_3, %c0_4] : memref<1x128xf32, #tpu.memory_space<vmem>>, vector<1x128xf32>
    %5 = vector.broadcast %4 : vector<1x128xf32> to vector<8x128xf32>
    %6 = arith.addf %3, %5 : vector<8x128xf32>
    %cst_5 = arith.constant 0.000000e+00 : f32
    %7 = vector.broadcast %cst_5 : f32 to vector<8x128xf32>
    %8 = arith.maximumf %6, %7 : vector<8x128xf32>
    %9 = arith.truncf %8 : vector<8x128xf32> to vector<8x128xbf16>
    %c0_6 = arith.constant 0 : index
    %c0_7 = arith.constant 0 : index
    %10 = vector.load %arg4[%c0_6, %c0_7] : memref<128x512xbf16, #tpu.memory_space<vmem>>, vector<128x512xbf16>
    %cst_8 = arith.constant dense<0.000000e+00> : vector<8x512xf32>
    %11 = tpu.matmul %9, %10, %cst_8 {dimension_numbers = #tpu.dot_dimension_numbers<[1], [0], [0], [1], [0, 0, 1, 1], [], []>} : vector<8x128xbf16>, vector<128x512xbf16>, vector<8x512xf32> -> vector<8x512xf32>
    %c0_9 = arith.constant 0 : index
    %c0_10 = arith.constant 0 : index
    %12 = vector.load %arg5[%c0_9, %c0_10] : memref<3x512xf32, #tpu.memory_space<vmem>>, vector<1x512xf32>
    %13 = vector.broadcast %12 : vector<1x512xf32> to vector<8x512xf32>
    %14 = arith.addf %11, %13 : vector<8x512xf32>
    %15 = arith.addf %0, %14 : vector<8x512xf32>
    %cst_11 = arith.constant dense<0.000000e+00> : vector<8xf32>
    %16 = vector.multi_reduction <add>, %15, %cst_11 [1] : vector<8x512xf32> to vector<8xf32>
    %17 = vector.shape_cast %16 : vector<8xf32> to vector<8x1xf32>
    %cst_12 = arith.constant 5.120000e+02 : f32
    %18 = vector.broadcast %cst_12 : f32 to vector<8x1xf32>
    %19 = arith.divf %17, %18 : vector<8x1xf32>
    %20 = vector.broadcast %19 : vector<8x1xf32> to vector<8x512xf32>
    %21 = arith.subf %15, %20 : vector<8x512xf32>
    %22 = arith.mulf %21, %21 : vector<8x512xf32>
    %cst_13 = arith.constant dense<0.000000e+00> : vector<8xf32>
    %23 = vector.multi_reduction <add>, %22, %cst_13 [1] : vector<8x512xf32> to vector<8xf32>
    %24 = vector.shape_cast %23 : vector<8xf32> to vector<8x1xf32>
    %cst_14 = arith.constant 5.120000e+02 : f32
    %25 = vector.broadcast %cst_14 : f32 to vector<8x1xf32>
    %26 = arith.divf %24, %25 : vector<8x1xf32>
    %cst_15 = arith.constant 9.99999974E-6 : f32
    %27 = vector.broadcast %cst_15 : f32 to vector<8x1xf32>
    %28 = arith.addf %26, %27 : vector<8x1xf32>
    %29 = math.rsqrt %28 : vector<8x1xf32>
    %30 = vector.broadcast %29 : vector<8x1xf32> to vector<8x512xf32>
    %31 = arith.mulf %21, %30 : vector<8x512xf32>
    %c1 = arith.constant 1 : index
    %c0_16 = arith.constant 0 : index
    %32 = vector.load %arg5[%c1, %c0_16] : memref<3x512xf32, #tpu.memory_space<vmem>>, vector<1x512xf32>
    %33 = vector.broadcast %32 : vector<1x512xf32> to vector<8x512xf32>
    %34 = arith.mulf %31, %33 : vector<8x512xf32>
    %c2 = arith.constant 2 : index
    %c0_17 = arith.constant 0 : index
    %35 = vector.load %arg5[%c2, %c0_17] : memref<3x512xf32, #tpu.memory_space<vmem>>, vector<1x512xf32>
    %36 = vector.broadcast %35 : vector<1x512xf32> to vector<8x512xf32>
    %37 = arith.addf %34, %36 : vector<8x512xf32>
    %c0_18 = arith.constant 0 : index
    %c0_19 = arith.constant 0 : index
    %38 = vector.load %arg6[%c0_18, %c0_19] : memref<8x512xf32, #tpu.memory_space<vmem>>, vector<8x512xf32>
    tpu.vector_store %arg6[%c0_18, %c0_19], %37 {strides = array<i32>} : memref<8x512xf32, #tpu.memory_space<vmem>>, vector<8x512xf32>,
    return
  }
  func.func @transform_0(%arg0: i32) -> (i32, i32) {
    %c0_i32 = arith.constant 0 : i32
    %c0_i32_0 = arith.constant 0 : i32
    return %arg0, %c0_i32 : i32, i32
  }
  func.func @transform_1(%arg0: i32) -> (i32, i32) {
    %c0_i32 = arith.constant 0 : i32
    %c0_i32_0 = arith.constant 0 : i32
    %c0_i32_1 = arith.constant 0 : i32
    return %c0_i32, %c0_i32_0 : i32, i32
  }
  func.func @transform_2(%arg0: i32) -> (i32, i32) {
    %c0_i32 = arith.constant 0 : i32
    %c0_i32_0 = arith.constant 0 : i32
    %c0_i32_1 = arith.constant 0 : i32
    return %c0_i32, %c0_i32_0 : i32, i32
  }
  func.func @transform_3(%arg0: i32) -> (i32, i32) {
    %c0_i32 = arith.constant 0 : i32
    %c0_i32_0 = arith.constant 0 : i32
    %c0_i32_1 = arith.constant 0 : i32
    return %c0_i32, %c0_i32_0 : i32, i32
  }
  func.func @transform_4(%arg0: i32) -> (i32, i32) {
    %c0_i32 = arith.constant 0 : i32
    %c0_i32_0 = arith.constant 0 : i32
    %c0_i32_1 = arith.constant 0 : i32
    return %c0_i32, %c0_i32_0 : i32, i32
  }
  func.func @transform_5(%arg0: i32) -> (i32, i32) {
    %c0_i32 = arith.constant 0 : i32
    %c0_i32_0 = arith.constant 0 : i32
    return %arg0, %c0_i32 : i32, i32
  }
}

</mosaic_0001>

<bundles_post_ra>
// kernel: _ffn_forward_impl.1
= control target key start
LH: loop header
LB: loop body
LE: loop exit
PB: predicated region body
PF: predicated region fallthrough
CT: control target
= control target key end

     0   :  { %10 = vsyncpa [#allocation3], 0  ;;  %s1915_s0 = inlined_call_operand.hbm [shape: f32[16,512], index: 0, kind: input, shape index: {}]   ;;  %s1916_s1 = inlined_call_operand.hbm [shape: bf16[512,128], index: 1, kind: input, shape index: {}]   ;;  %s1917_s2 = inlined_call_operand.vmem [shape: f32[1,128], index: 2, kind: input, shape index: {}]   ;;  %s1918_s3 = inlined_call_operand.hbm [shape: bf16[128,512], index: 3, kind: input, shape index: {}]   ;;  %s1919_s4 = inlined_call_operand.hbm [shape: f32[3,512], index: 4, kind: input, shape index: {}]   ;;  %s1920_s5 = inlined_call_operand.hbm [shape: f32[16,512], index: 5, kind: output, shape index: {}]  }
   0x1   :  { %12 = vsyncpa [#allocation3 + $0x1], 0 }
   0x2   :  { %13 = vsyncpa [#allocation6], 0 }
   0x3   :  { %14 = vsyncpa [#allocation9], 0 }
   0x4   :  { %15 = vsyncpa [#allocation4], 0 }
   0x5   :  { %17 = vsyncpa [#allocation4 + $0x1], 0  ;;  %s1726_s18 = smov 0   ;;  %s1728_s19 = smov 0  }
   0x6   :  { %s1730_s20 = smov 0   ;;  %s1732_s21 = smov 0  }
   0x7 LB: > { %s175_s24 = sshll.u32 %s1916_s1, 4  ;;  %s1750_s25 = sadd.s32 4294967295, %s1686_s21   ;;  %s1686_s21 = sphi %s1732_s21, %s1931_s21   ;;  %s1682_s20 = sphi %s1730_s20, %s1930_s20   ;;  %s1678_s19 = sphi %s1728_s19, %s1929_s19   ;;  %s1674_s18 = sphi %s1726_s18, %s1928_s18   ;;  %s176_s24 = int_to_ptr.hbm [resolvable:$true] %s175_s24 }
   0x8   : > { %p1064_p0 = scmp.ge.s32.totalorder %s1686_s21, 1  ;;  %p44_p1 = scmp.eq.s32.totalorder %s1750_s25, 0 }
   0x9   : > { %p164_p2 = scmp.lt.s32.totalorder %s1686_s21, 3  ;;  %s1688_s27 = smov [#allocation5]  }
   0xa   : > { %s177_s28 = sshll.u32 %s1688_s27, 4  ;;  %s192_s6 = sshll.u32 %s1918_s3, 4  ;;  %s178_s28 = int_to_ptr.vmem [resolvable:$true] %s177_s28  ;;  %s193_s6 = int_to_ptr.hbm [resolvable:$true] %s192_s6 }
   0xb   : > { %p1755_p3 = pnand %p1064_p0, %p164_p2  ;;  %s1689_s8 = smov [#allocation7]  }
   0xc   : > { %s194_s9 = sshll.u32 %s1689_s8, 4  ;;  %s1690_s10 = smov 64   ;;  %s195_s9 = int_to_ptr.vmem [resolvable:$true] %s194_s9 }
   0xd   : > { %p1421_p4 = pneg %p1755_p3  ;;  %s1691_s11 = smov 4  }
   0xe   : > { %s1692_s12 = smov 256   ;;  %s1693_s13 = smov 16  }
   0xf   : > { %p1767_p6 = pnand %p1421_p4, %p44_p1  ;;  %s207_s16 = sshll.u32 %s1919_s4, 4  ;;  %s208_s16 = int_to_ptr.hbm [resolvable:$true] %s207_s16 }
  0x10   : > { %s1694_s17 = smov [#allocation8]   ;;  %s1063_s23 = sadd.s32 4294967294, %s1686_s21  }
  0x11   : > { %1424 = dma.hbm_to_vmem [thread:$0]  (!%p1767_p6), %s176_s24, 4096, %s178_s28, [#allocation6], %s1690_s10, %s1690_s10, %s1691_s11  }
  0x12   : > { %1427 = dma.hbm_to_vmem [thread:$0]  (!%p1767_p6), %s193_s6, 4096, %s195_s9, [#allocation6], %s1692_s12, %s1692_s12, %s1693_s13  }
  0x13   : > { %s209_s22 = sshll.u32 %s1694_s17, 4  ;;  %s1782_s24 = sadd.s32 1, %s1686_s21   ;;  %s210_s22 = int_to_ptr.vmem [resolvable:$true] %s209_s22 }
  0x14   : > { %1430 = dma.hbm_to_vmem [thread:$0]  (!%p1767_p6), %s208_s16, 256, %s210_s22, [#allocation9]  }
  0x15   : > { %s30_s27 = sadd.s32 1, %s1682_s20  ;;  %s27_s28 = ssub.s32 %s1686_s21, %s1782_s24 }
  0x16   : > { %p37_p7 = scmp.ne.s32.totalorder %s1682_s20, %s1678_s19  ;;  %p28_p8 = scmp.eq.s32.totalorder %s27_s28, 0 }
  0x17   : > { %p38_p9 = scmp.eq.s32.totalorder %s1686_s21, 0  ;;  %p43_p10 = scmp.ne.s32.totalorder %s1678_s19, %s1674_s18 }
  0x18   : > { %p151_p11 = scmp.eq.s32.totalorder %s1750_s25, 1  ;;  %p157_p0 = scmp.eq.s32.totalorder %s1063_s23, 1 }
  0x19   : > { %s1794_s29 = scalar_select %p28_p8, %s1682_s20, %s30_s27  }
  0x1a   : > { %p1798_p12 = por %p44_p1, %p43_p10  ;;  %p1802_p13 = por %p151_p11, %p37_p7 }
  0x1b   : > { %p39_p2 = por %p38_p9, %p37_p7  ;;  %s220_s7 = sand.u32 1, %s1682_s20  }
  0x1c   : > { %p1807_p4 = por %p157_p0, %p43_p10  ;;  %p1442_p6 = scmp.lt.s32.totalorder %s1686_s21, 2 }
  0x1d   : > { %s1069_s9 = sshll.u32 %s220_s7, 5  ;;  %s1339_s10 = sshll.u32 %s1686_s21, 5 }
  0x1e   : > { %s229_s13 = scalar_lea.hbm %s1915_s0, %s1339_s10  ;;  %s224_s15 = scalar_lea.vmem [#allocation2], %s1069_s9 }
  0x1f   : > { %s231_s14 = sshll.u32 %s229_s13, 4  ;;  %s233_s16 = sshll.u32 %s224_s15, 4  ;;  %s232_s14 = int_to_ptr.hbm [resolvable:$true] %s231_s14  ;;  %s234_s16 = int_to_ptr.vmem [resolvable:$true] %s233_s16 }
  0x20   : > { %p1816_p8 = pnand %p1442_p6, %p39_p2  ;;  %s221_s22 = scalar_lea.sflag [#allocation3], %s220_s7 }
  0x21   : > { %s1582_s23 = sshra.s32 %s232_s14, 4  ;;  %s1589_s9 = scalar_lea.hbm %s1915_s0, 64  ;;  %s1583_s23 = int_to_ptr.hbm [resolvable:$true] %s1582_s23 }
  0x22   : > { %s1584_s27 = scalar_lea.hbm %s1583_s23, 32  ;;  %p1586_p9 = pneg %p1816_p8 }
  0x23   : > { %p1585_p7 = scmp.ne.s32.totalorder %s1583_s23, %s1584_s27  ;;  %p1590_p0 = scmp.lt.s32.totalorder %s1583_s23, %s1915_s0 }
  0x24   : > { %p1591_p2 = scmp.lt.s32.totalorder %s1589_s9, %s1584_s27 }
  0x25   : > { %p1587_p10 = pnand %p1586_p9, %p1585_p7 }
  0x26   : > { %p1592_p6 = por %p1591_p2, %p1590_p0 }
  0x27   : > { %p1588_p11 = pneg %p1587_p10 }
  0x29   : > { %p1593_p5 = pnand %p1592_p6, %p1588_p11 }
  0x2b   : > { %1596 = shalt.err (!%p1593_p5)
}
  0x2c   : > { %1434 = dma.hbm_to_vmem [thread:$0]  (!%p1816_p8), %s232_s14, 512, %s234_s16, %s221_s22  }
  0x2d   : > { %242 = sbr.rel (%p1755_p3) target bundleno = 648 (0x288), region = 40  ;;  %s1833_s7 = sand.u32 (!%p1755_p3), 1, %s1678_s19  }
  0x2e   : > { %s1073_s13 = sshll.u32 (!%p1755_p3), %s1833_s7, 5  ;;  %s245_s15 = scalar_lea.sflag (!%p1755_p3), [#allocation3], %s1833_s7 }
  0x2f   : > { %s1839_s23 = scalar_lea.vmem (!%p1755_p3), [#allocation2], %s1073_s13 }
  0x32   : > { %1657 = dma.done.wait (%p1798_p12), %s245_s15, 512  }
  0x33   : > { %1659 = vsyncadd (%p1798_p12), %s245_s15, 4294966784 }
  0x34   : > { %1661 = dma.done.wait (%p44_p1), [#allocation6], 8192  }
  0x35   : > { %1663 = vsyncadd (%p44_p1), [#allocation6], 4294959104 }
  0x36   : > { %1665 = dma.done.wait (%p44_p1), [#allocation9], 256  }
  0x37   : > { %1667 = vsyncadd (%p44_p1), [#allocation9], 4294967040  ;;  %v1347_v0 = vld [vmem:[#allocation5 + $0x38] sm:$0xff]  ;;  %v1346_v4 = vld [vmem:[#allocation5 + $0x30] sm:$0xff]  ;;  %s1404_s14 = sshll.u32 %s1750_s25, 5  ;;  %s290_s25 = scalar_lea.vmem [#allocation10], %s1073_s13 }
  0x38   : > { %v1355_v1 = vld [vmem:[#allocation5 + $0x78] sm:$0xff]  ;;  %559 = vmatpush.bf16.msra.mxu0 %v1347_v0  ;;  %v1354_v5 = vld [vmem:[#allocation5 + $0x70] sm:$0xff]  ;;  %v1345_v8 = vld [vmem:[#allocation5 + $0x28] sm:$0xff]  ;;  %s959_s22 = scalar_lea.hbm %s1920_s5, %s1404_s14  ;;  %s961_s27 = sshll.u32 %s290_s25, 4  ;;  %s962_s27 = int_to_ptr.vmem [resolvable:$true] %s961_s27 }
  0x39   : > { %v1363_v2 = vld [vmem:[#allocation5 + $0xb8] sm:$0xff]  ;;  %572 = vmatpush.bf16.msra.mxu1 %v1355_v1  ;;  %v1362_v6 = vld [vmem:[#allocation5 + $0xb0] sm:$0xff]  ;;  %v1353_v9 = vld [vmem:[#allocation5 + $0x68] sm:$0xff]  ;;  %s963_s28 = sshll.u32 %s959_s22, 4  ;;  %s948_s10 = scalar_lea.sflag [#allocation4], %s1833_s7  ;;  %s964_s28 = int_to_ptr.hbm [resolvable:$true] %s963_s28 }
  0x3a   : > { %v1371_v3 = vld [vmem:[#allocation5 + $0xf8] sm:$0xff]  ;;  %585 = vmatpush.bf16.msra.mxu2 %v1363_v2  ;;  %v1370_v7 = vld [vmem:[#allocation5 + $0xf0] sm:$0xff]  ;;  %v1361_v10 = vld [vmem:[#allocation5 + $0xa8] sm:$0xff]  ;;  %s1626_s9 = sshra.s32 %s964_s28, 4  ;;  %s1632_s13 = scalar_lea.hbm %s1920_s5, 64  ;;  %s1627_s9 = int_to_ptr.hbm [resolvable:$true] %s1626_s9 }
  0x3b   : > { %598 = vmatpush.bf16.msra.mxu3 %v1371_v3  ;;  %v1369_v11 = vld [vmem:[#allocation5 + $0xe8] sm:$0xff]  ;;  %v1344_v12 = vld [vmem:[#allocation5 + $0x20] sm:$0xff]  ;;  %v1343_v16 = vld [vmem:[#allocation5 + $0x18] sm:$0xff]  ;;  %s1628_s11 = scalar_lea.hbm %s1627_s9, 32  ;;  %p1633_p12 = scmp.lt.s32.totalorder %s1627_s9, %s1920_s5 }
  0x3c   : > { %560 = vmatpush.bf16.msra.mxu0 %v1346_v4  ;;  %v1352_v13 = vld [vmem:[#allocation5 + $0x60] sm:$0xff]  ;;  %v1351_v17 = vld [vmem:[#allocation5 + $0x58] sm:$0xff]  ;;  %v1342_v20 = vld [vmem:[#allocation5 + $0x10] sm:$0xff]  ;;  %p1629_p1 = scmp.ne.s32.totalorder %s1627_s9, %s1628_s11  ;;  %p1634_p8 = scmp.lt.s32.totalorder %s1632_s13, %s1628_s11 }
  0x3d   : > { %573 = vmatpush.bf16.msra.mxu1 %v1354_v5  ;;  %v1360_v14 = vld [vmem:[#allocation5 + $0xa0] sm:$0xff]  ;;  %v1359_v18 = vld [vmem:[#allocation5 + $0x98] sm:$0xff]  ;;  %v1350_v21 = vld [vmem:[#allocation5 + $0x50] sm:$0xff] }
  0x3e   : > { %586 = vmatpush.bf16.msra.mxu2 %v1362_v6  ;;  %v1368_v15 = vld [vmem:[#allocation5 + $0xe0] sm:$0xff]  ;;  %v1367_v19 = vld [vmem:[#allocation5 + $0xd8] sm:$0xff]  ;;  %v1358_v22 = vld [vmem:[#allocation5 + $0x90] sm:$0xff]  ;;  %p1630_p3 = pnand %p1629_p1, %p1802_p13  ;;  %p1635_p7 = por %p1634_p8, %p1633_p12 }
  0x3f   : > { %599 = vmatpush.bf16.msra.mxu3 %v1370_v7  ;;  %v1366_v23 = vld [vmem:[#allocation5 + $0xd0] sm:$0xff]  ;;  %v1341_v24 = vld [vmem:[#allocation5 + $0x8] sm:$0xff]  ;;  %v1340_v28 = vld [vmem:[#allocation5] sm:$0xff] }
  0x40   : > { %561 = vmatpush.bf16.msra.mxu0 %v1345_v8  ;;  %v1349_v25 = vld [vmem:[#allocation5 + $0x48] sm:$0xff]  ;;  %v1348_v29 = vld [vmem:[#allocation5 + $0x40] sm:$0xff]  ;;  %v1402_v33 = vld [vmem:[#allocation7 + $0xec] sm:$0xf0]  ;;  %p1631_p5 = pneg %p1630_p3 }
  0x41   : > { %574 = vmatpush.bf16.msra.mxu1 %v1353_v9  ;;  %v1357_v26 = vld [vmem:[#allocation5 + $0x88] sm:$0xff]  ;;  %v1320_v30 = vld [vmem:[#allocation7 + $0xe0] sm:$0xf]  ;;  %v1400_v34 = vld [vmem:[#allocation7 + $0xe4] sm:$0xf] }
  0x42   : > { %587 = vmatpush.bf16.msra.mxu2 %v1361_v10  ;;  %v1365_v27 = vld [vmem:[#allocation5 + $0xc8] sm:$0xff]  ;;  %v1356_v31 = vld [vmem:[#allocation5 + $0x80] sm:$0xff]  ;;  %v1322_v35 = vld [vmem:[#allocation7 + $0xf0] sm:$0xf0]  ;;  %v1321_v42 = vor.u32 %v1402_v33, %v1320_v30  ;;  %p1636_p9 = pnand %p1635_p7, %p1631_p5 }
  0x43   : > { %600 = vmatpush.bf16.msra.mxu3 %v1369_v11  ;;  %v1364_v32 = vld [vmem:[#allocation5 + $0xc0] sm:$0xff]  ;;  %v1857_v37 = vld [vmem:[%s1839_s23 + $0x8] sm:$0xff]  ;;  %v1860_v38 = vld [vmem:[%s1839_s23 + $0x10] sm:$0xff]  ;;  %v1325_v43 = vor.u32 %v1400_v34, %v1322_v35 }
  0x44   : > { %562 = vmatpush.bf16.msra.mxu0 %v1344_v12  ;;  %v1854_v36 = vld [vmem:[%s1839_s23] sm:$0xff]  ;;  %v1863_v39 = vld [vmem:[%s1839_s23 + $0x18] sm:$0xff]  ;;  %v1328_v40 = vld [vmem:[#allocation7 + $0xe8] sm:$0xf]  ;;  %v296_v48 = vpack.c.bf16 %v1857_v37, %v1857_v37  ;;  %v297_v52 = vpack.c.bf16 %v1860_v38, %v1860_v38 }
  0x45   : > { %575 = vmatpush.bf16.msra.mxu1 %v1352_v13  ;;  %v1403_v41 = vld [vmem:[#allocation7 + $0xf4] sm:$0xf0]  ;;  %v1401_v44 = vld [vmem:[#allocation7 + $0xec] sm:$0xf]  ;;  %v1330_v45 = vld [vmem:[#allocation7 + $0xf8] sm:$0xf0]  ;;  %v295_v47 = vpack.c.bf16 %v1854_v36, %v1854_v36  ;;  %v298_v53 = vpack.c.bf16 %v1863_v39, %v1863_v39 }
  0x46   : > { %588 = vmatpush.bf16.msra.mxu2 %v1360_v14  ;;  %v1304_v46 = vld [vmem:[#allocation7 + $0xc0] sm:$0xf]  ;;  %v1398_v49 = vld [vmem:[#allocation7 + $0xcc] sm:$0xf0]  ;;  %v1396_v50 = vld [vmem:[#allocation7 + $0xc4] sm:$0xf]  ;;  %v1329_v54 = vor.u32 %v1403_v41, %v1328_v40  ;;  %v1333_v55 = vor.u32 %v1401_v44, %v1330_v45 }
  0x47   : > { %601 = vmatpush.bf16.msra.mxu3 %v1368_v15  ;;  %v1306_v51 = vld [vmem:[#allocation7 + $0xd0] sm:$0xf0]  ;;  %v1312_v56 = vld [vmem:[#allocation7 + $0xc8] sm:$0xf]  ;;  %v1399_v57 = vld [vmem:[#allocation7 + $0xd4] sm:$0xf0]  ;;  %v1305_v58 = vor.u32 %v1398_v49, %v1304_v46 }
  0x48   : > { %563 = vmatpush.bf16.msra.mxu0 %v1343_v16  ;;  %v1309_v59 = vor.u32 %v1396_v50, %v1306_v51  ;;  %v1397_v60 = vld [vmem:[#allocation7 + $0xcc] sm:$0xf]  ;;  %v1314_v61 = vld [vmem:[#allocation7 + $0xd8] sm:$0xf0]  ;;  %v1288_v62 = vld [vmem:[#allocation7 + $0xa0] sm:$0xf]  ;;  %v1313_v2 = vor.u32 %v1399_v57, %v1312_v56 }
  0x49   : > { %576 = vmatpush.bf16.msra.mxu1 %v1351_v17  ;;  %v1394_v63 = vld [vmem:[#allocation7 + $0xac] sm:$0xf0]  ;;  %v1392_v0 = vld [vmem:[#allocation7 + $0xa4] sm:$0xf]  ;;  %v1290_v1 = vld [vmem:[#allocation7 + $0xb0] sm:$0xf0]  ;;  %v1317_v3 = vor.u32 %v1397_v60, %v1314_v61 }
  0x4a   : > { %589 = vmatpush.bf16.msra.mxu2 %v1359_v18  ;;  %v1296_v4 = vld [vmem:[#allocation7 + $0xa8] sm:$0xf]  ;;  %v1395_v5 = vld [vmem:[#allocation7 + $0xb4] sm:$0xf0]  ;;  %v1289_v6 = vor.u32 %v1394_v63, %v1288_v62  ;;  %v1293_v7 = vor.u32 %v1392_v0, %v1290_v1  ;;  %v1393_v8 = vld [vmem:[#allocation7 + $0xac] sm:$0xf] }
  0x4b   : > { %602 = vmatpush.bf16.msra.mxu3 %v1367_v19  ;;  %v1298_v9 = vld [vmem:[#allocation7 + $0xb8] sm:$0xf0]  ;;  %v1272_v10 = vld [vmem:[#allocation7 + $0x80] sm:$0xf]  ;;  %v1390_v11 = vld [vmem:[#allocation7 + $0x8c] sm:$0xf0]  ;;  %v1297_v14 = vor.u32 %v1395_v5, %v1296_v4 }
  0x4c   : > { %564 = vmatpush.bf16.msra.mxu0 %v1342_v20  ;;  %v1388_v12 = vld [vmem:[#allocation7 + $0x84] sm:$0xf]  ;;  %v1274_v13 = vld [vmem:[#allocation7 + $0x90] sm:$0xf0]  ;;  %v1301_v15 = vor.u32 %v1393_v8, %v1298_v9  ;;  %v1280_v16 = vld [vmem:[#allocation7 + $0x88] sm:$0xf]  ;;  %v1273_v17 = vor.u32 %v1390_v11, %v1272_v10 }
  0x4d   : > { %577 = vmatpush.bf16.msra.mxu1 %v1350_v21  ;;  %v1277_v18 = vor.u32 %v1388_v12, %v1274_v13  ;;  %v1391_v19 = vld [vmem:[#allocation7 + $0x94] sm:$0xf0]  ;;  %v1389_v20 = vld [vmem:[#allocation7 + $0x8c] sm:$0xf]  ;;  %v1282_v21 = vld [vmem:[#allocation7 + $0x98] sm:$0xf0] }
  0x4e   : > { %590 = vmatpush.bf16.msra.mxu2 %v1358_v22  ;;  %v1281_v22 = vor.u32 %v1391_v19, %v1280_v16  ;;  %v1387_v30 = vld [vmem:[#allocation7 + $0x74] sm:$0xf0]  ;;  %v1385_v33 = vld [vmem:[#allocation7 + $0x6c] sm:$0xf]  ;;  %v1266_v34 = vld [vmem:[#allocation7 + $0x78] sm:$0xf0] }
  0x4f   : > { %603 = vmatpush.bf16.msra.mxu3 %v1366_v23  ;;  %v1285_v23 = vor.u32 %v1389_v20, %v1282_v21  ;;  %v1269_v35 = vor.u32 %v1385_v33, %v1266_v34  ;;  %v1240_v40 = vld [vmem:[#allocation7 + $0x40] sm:$0xf]  ;;  %v1382_v41 = vld [vmem:[#allocation7 + $0x4c] sm:$0xf0]  ;;  %v1242_v44 = vld [vmem:[#allocation7 + $0x50] sm:$0xf0] }
  0x50   : > { %565 = vmatpush.bf16.msra.mxu0 %v1341_v24  ;;  %v1256_v24 = vld [vmem:[#allocation7 + $0x60] sm:$0xf]  ;;  %v1248_v45 = vld [vmem:[#allocation7 + $0x48] sm:$0xf]  ;;  %v1383_v46 = vld [vmem:[#allocation7 + $0x54] sm:$0xf0] }
  0x51   : > { %578 = vmatpush.bf16.msra.mxu1 %v1349_v25  ;;  %v1386_v25 = vld [vmem:[#allocation7 + $0x6c] sm:$0xf0]  ;;  %v1381_v49 = vld [vmem:[#allocation7 + $0x4c] sm:$0xf]  ;;  %v1250_v50 = vld [vmem:[#allocation7 + $0x58] sm:$0xf0] }
  0x52   : > { %591 = vmatpush.bf16.msra.mxu2 %v1357_v26  ;;  %v1384_v26 = vld [vmem:[#allocation7 + $0x64] sm:$0xf]  ;;  %v1253_v51 = vor.u32 %v1381_v49, %v1250_v50  ;;  %v1226_v56 = vld [vmem:[#allocation7 + $0x30] sm:$0xf0]  ;;  %v1232_v57 = vld [vmem:[#allocation7 + $0x28] sm:$0xf] }
  0x53   : > { %604 = vmatpush.bf16.msra.mxu3 %v1365_v27  ;;  %v1257_v27 = vor.u32 %v1386_v25, %v1256_v24  ;;  %v1377_v61 = vld [vmem:[#allocation7 + $0x2c] sm:$0xf]  ;;  %v1234_v62 = vld [vmem:[#allocation7 + $0x38] sm:$0xf0]  ;;  %v1208_v0 = vld [vmem:[#allocation7] sm:$0xf] }
  0x54   : > { %566 = vmatpush.bf16.msra.mxu0 %v1340_v28  ;;  %v1258_v28 = vld [vmem:[#allocation7 + $0x70] sm:$0xf0]  ;;  %v1237_v63 = vor.u32 %v1377_v61, %v1234_v62  ;;  %v1374_v1 = vld [vmem:[#allocation7 + $0xc] sm:$0xf0]  ;;  %v1216_v5 = vld [vmem:[#allocation7 + $0x8] sm:$0xf] }
  0x55   : > { %579 = vmatpush.bf16.msra.mxu1 %v1348_v29  ;;  %v1264_v29 = vld [vmem:[#allocation7 + $0x68] sm:$0xf]  ;;  %v1210_v4 = vld [vmem:[#allocation7 + $0x10] sm:$0xf0]  ;;  %v1373_v9 = vld [vmem:[#allocation7 + $0xc] sm:$0xf] }
  0x56   : > { %592 = vmatpush.bf16.msra.mxu2 %v1356_v31  ;;  %v1261_v31 = vor.u32 %v1384_v26, %v1258_v28  ;;  %v1218_v10 = vld [vmem:[#allocation7 + $0x18] sm:$0xf0]  ;;  %v1487_v12 = vld [vmem:[%s1917_s2] ss:$0 sm:$0xff] }
  0x57   : > { %605 = vmatpush.bf16.msra.mxu3 %v1364_v32  ;;  %567 = vmatmul.bf16.vlgmr.msra.gmra.mxu0 %v295_v47  ;;  %v1265_v32 = vor.u32 %v1387_v30, %v1264_v29  ;;  %v1221_v11 = vor.u32 %v1373_v9, %v1218_v10 }
  0x58   : > { %815 = vmatpush.bf16.msrb.mxu0 %v1321_v42  ;;  %580 = vmatmul.bf16.vlgmr.msra.gmra.mxu1 %v296_v48  ;;  %v1380_v42 = vld [vmem:[#allocation7 + $0x44] sm:$0xf]  ;;  %v1249_v48 = vor.u32 %v1383_v46, %v1248_v45 }
  0x59   : > { %828 = vmatpush.bf16.msrb.mxu1 %v1325_v43  ;;  %593 = vmatmul.bf16.vlgmr.msra.gmra.mxu2 %v297_v52  ;;  %v1241_v43 = vor.u32 %v1382_v41, %v1240_v40  ;;  %v1245_v47 = vor.u32 %v1380_v42, %v1242_v44  ;;  %v1224_v52 = vld [vmem:[#allocation7 + $0x20] sm:$0xf] }
  0x5a   : > { %606 = vmatmul.bf16.vlgmr.msra.gmra.mxu3 %v298_v53  ;;  %841 = vmatpush.bf16.msrb.mxu2 %v1329_v54  ;;  %v1378_v53 = vld [vmem:[#allocation7 + $0x2c] sm:$0xf0]  ;;  %v1376_v54 = vld [vmem:[#allocation7 + $0x24] sm:$0xf] }
  0x5b   : > { %854 = vmatpush.bf16.msrb.mxu3 %v1333_v55  ;;  %v1225_v55 = vor.u32 %v1378_v53, %v1224_v52 }
  0x5c   : > { %816 = vmatpush.bf16.msrb.mxu0 %v1305_v58  ;;  %v1379_v58 = vld [vmem:[#allocation7 + $0x34] sm:$0xf0] }
  0x5d   : > { %829 = vmatpush.bf16.msrb.mxu1 %v1309_v59  ;;  %v1229_v59 = vor.u32 %v1376_v54, %v1226_v56  ;;  %v1233_v60 = vor.u32 %v1379_v58, %v1232_v57 }
  0x5e   : > { %842 = vmatpush.bf16.msrb.mxu2 %v1313_v2  ;;  %v1372_v2 = vld [vmem:[#allocation7 + $0x4] sm:$0xf] }
  0x5f   : > { %855 = vmatpush.bf16.msrb.mxu3 %v1317_v3  ;;  %v1209_v3 = vor.u32 %v1374_v1, %v1208_v0 }
  0x60   : > { %817 = vmatpush.bf16.msrb.mxu0 %v1289_v6  ;;  %v1375_v6 = vld [vmem:[#allocation7 + $0x14] sm:$0xf0] }
  0x61   : > { %830 = vmatpush.bf16.msrb.mxu1 %v1293_v7  ;;  %v1213_v7 = vor.u32 %v1372_v2, %v1210_v4  ;;  %v1217_v8 = vor.u32 %v1375_v6, %v1216_v5 }
  0x62   : > { %843 = vmatpush.bf16.msrb.mxu2 %v1297_v14 }
  0x63   : > { %856 = vmatpush.bf16.msrb.mxu3 %v1301_v15 }
  0x64   : > { %818 = vmatpush.bf16.msrb.mxu0 %v1273_v17 }
  0x65   : > { %831 = vmatpush.bf16.msrb.mxu1 %v1277_v18 }
  0x66   : > { %844 = vmatpush.bf16.msrb.mxu2 %v1281_v22 }
  0x67   : > { %857 = vmatpush.bf16.msrb.mxu3 %v1285_v23 }
  0x68   : > { %819 = vmatpush.bf16.msrb.mxu0 %v1257_v27  ;;  %v645_v27 = vld [vmem:[#allocation8] ss:$4 sm:$0xf] }
  0x69   : > { %832 = vmatpush.bf16.msrb.mxu1 %v1261_v31  ;;  %v647_v28 = vperm.slane %v645_v27, 0  ;;  %v648_v29 = vperm.slane %v645_v27, 1  ;;  %v649_v34 = vperm.slane %v645_v27, 2 }
  0x6a   : > { %845 = vmatpush.bf16.msrb.mxu2 %v1265_v32 }
  0x6b   : > { %858 = vmatpush.bf16.msrb.mxu3 %v1269_v35  ;;  %v650_v35 = vperm.slane %v645_v27, 3 }
  0x6c   : > { %820 = vmatpush.bf16.msrb.mxu0 %v1241_v43 }
  0x6d   : > { %833 = vmatpush.bf16.msrb.mxu1 %v1245_v47 }
  0x6e   : > { %846 = vmatpush.bf16.msrb.mxu2 %v1249_v48 }
  0x6f   : > { %859 = vmatpush.bf16.msrb.mxu3 %v1253_v51 }
  0x70   : > { %821 = vmatpush.bf16.msrb.mxu0 %v1225_v55  ;;  %v1695_v55 = vmov 512.0  }
  0x71   : > { %834 = vmatpush.bf16.msrb.mxu1 %v1229_v59  ;;  %1488 = vrcp.f32 %v1695_v55 }
  0x72   : > { %847 = vmatpush.bf16.msrb.mxu2 %v1233_v60 }
  0x73   : > { %860 = vmatpush.bf16.msrb.mxu3 %v1237_v63 }
  0x74   : > { %822 = vmatpush.bf16.msrb.mxu0 %v1209_v3 }
  0x75   : > { %835 = vmatpush.bf16.msrb.mxu1 %v1213_v7 }
  0x76   : > { %848 = vmatpush.bf16.msrb.mxu2 %v1217_v8 }
  0x77   : > { %861 = vmatpush.bf16.msrb.mxu3 %v1221_v11 }
  0xd4   : > { %v568_v13 = vpop.f32.mrf.mxu0 }
  0xd5   : > { %v581_v14 = vpop.f32.mrf.mxu1  ;;  %v569_v15 = vadd.f32 %v1487_v12, %v568_v13 }
  0xd7   : > { %v582_v16 = vadd.f32 %v581_v14, %v569_v15  ;;  %v914_v14 = vld [vmem:[#allocation8 + $0x1] ss:$4 sm:$0xf] }
  0xdc   : > { %v594_v17 = vpop.f32.mrf.mxu2  ;;  %v570_v20 = vpop.f32.mrf.mxu0 }
  0xdd   : > { %v607_v18 = vpop.f32.mrf.mxu3  ;;  %v595_v19 = vadd.f32 %v594_v17, %v582_v16  ;;  %v583_v21 = vpop.f32.mrf.mxu1  ;;  %v929_v16 = vld [vmem:[#allocation8 + $0x2] ss:$4 sm:$0xf]  ;;  %v918_v20 = vperm.slane %v914_v14, 2 }
  0xde   : > { %v919_v21 = vperm.slane %v914_v14, 3 }
  0xdf   : > { %v608_v22 = vadd.f32 %v607_v18, %v595_v19  ;;  %v916_v18 = vperm.slane %v914_v14, 0  ;;  %v917_v19 = vperm.slane %v914_v14, 1 }
  0xe1   : > { %v611_v23 = vmax.f32 %v608_v22, 0.0  ;;  %v931_v22 = vperm.slane %v929_v16, 0 }
  0xe3   : > { %v612_v24 = vpack.c.bf16 %v611_v23, %v611_v23  ;;  %v932_v23 = vperm.slane %v929_v16, 1 }
  0xe4   : > { %v596_v25 = vpop.f32.mrf.mxu2 }
  0xe5   : > { %v609_v26 = vpop.f32.mrf.mxu3  ;;  %823 = vmatmul.bf16.vlgmr.msrb.gmra.mxu0 %v612_v24  ;;  %836 = vmatmul.bf16.vlgmr.msrb.gmra.mxu1 %v612_v24 }
  0xe6   : > { %849 = vmatmul.bf16.vlgmr.msrb.gmra.mxu2 %v612_v24  ;;  %862 = vmatmul.bf16.vlgmr.msrb.gmra.mxu3 %v612_v24  ;;  %v933_v24 = vperm.slane %v929_v16, 2 }
 0x162   : > { %v824_v30 = vpop.f32.mrf.mxu0  ;;  %v837_v31 = vpop.f32.mrf.mxu1 }
 0x163   : > { %v825_v32 = vadd.f32 %v824_v30, %v647_v28  ;;  %v838_v33 = vadd.f32 %v837_v31, %v648_v29  ;;  %v934_v30 = vperm.slane %v929_v16, 3 }
 0x165   : > { %v867_v40 = vadd.f32 %v825_v32, %v1854_v36  ;;  %v868_v41 = vadd.f32 %v838_v33, %v1857_v37  ;;  %v1489_v36 = vpop.eup %1488 }
 0x166   : > { %v877_v37 = vmul.f32 512.0, %v1489_v36  ;;  %vm881_vm0 = vweird.f32 %v1489_v36 }
 0x167   : > { %v871_v49 = vadd.f32 %v868_v41, %v867_v40 }
 0x168   : > { %v878_v56 = vsub.f32 1.0, %v877_v37 }
 0x169   : > { %v850_v42 = vpop.f32.mrf.mxu2  ;;  %v863_v43 = vpop.f32.mrf.mxu3 }
 0x16a   : > { %v851_v44 = vadd.f32 %v850_v42, %v649_v34  ;;  %v864_v45 = vadd.f32 %v863_v43, %v650_v35  ;;  %v826_v46 = vpop.f32.mrf.mxu0  ;;  %v839_v47 = vpop.f32.mrf.mxu1  ;;  %v879_v57 = vmul.f32 %v1489_v36, %v878_v56 }
 0x16c   : > { %v869_v48 = vadd.f32 %v851_v44, %v1860_v38  ;;  %v870_v50 = vadd.f32 %v864_v45, %v1863_v39  ;;  %v880_v58 = vadd.f32 %v1489_v36, %v879_v57 }
 0x16e   : > { %v872_v51 = vadd.f32 %v871_v49, %v869_v48  ;;  %v882_v59 = vsel %vm881_vm0, %v1489_v36, %v880_v58 }
 0x170   : > { %v873_v52 = vadd.f32 %v872_v51, %v870_v50 }
 0x171   : > { %v852_v53 = vpop.f32.mrf.mxu2  ;;  %v865_v54 = vpop.f32.mrf.mxu3 }
 0x172   : > { %874 = vadd.xlane.f32.xlu0 %v873_v52 }
 0x1e5   : > { %v875_v60 = vpop.xlane.xlu0 %874 }
 0x1e6   : > { %v883_v61 = vmul.f32 %v882_v59, %v875_v60 }
 0x1e8   : > { %v884_v38 = vsub.f32 %v867_v40, %v883_v61  ;;  %v885_v62 = vsub.f32 %v868_v41, %v883_v61  ;;  %v886_v63 = vsub.f32 %v869_v48, %v883_v61  ;;  %v887_v39 = vsub.f32 %v870_v50, %v883_v61 }
 0x1ea   : > { %v888_v0 = vmul.f32 %v884_v38, %v884_v38  ;;  %v889_v1 = vmul.f32 %v885_v62, %v885_v62  ;;  %v890_v2 = vmul.f32 %v886_v63, %v886_v63  ;;  %v891_v4 = vmul.f32 %v887_v39, %v887_v39 }
 0x1ec   : > { %v892_v3 = vadd.f32 %v889_v1, %v888_v0 }
 0x1ee   : > { %v893_v5 = vadd.f32 %v892_v3, %v890_v2 }
 0x1f0   : > { %v894_v6 = vadd.f32 %v893_v5, %v891_v4 }
 0x1f2   : > { %895 = vadd.xlane.f32.xlu0 %v894_v6 }
 0x265   : > { %v896_v7 = vpop.xlane.xlu0 %895 }
 0x266   : > { %v897_v8 = vmul.f32 %v896_v7, %v882_v59 }
 0x268   : > { %v898_v9 = vadd.f32 1e-05, %v897_v8 }
 0x26a   : > { %1490 = vrsqrt.f32 %v898_v9  ;;  %vm905_vm2 = vweird.f32 %v898_v9 }
 0x270   : > { %v1491_v10 = vpop.eup %1490 }
 0x271   : > { %v900_v11 = vmul.f32 %v1491_v10, %v898_v9  ;;  %vm906_vm1 = vweird.f32 %v1491_v10 }
 0x272   : > { %vm907_vm3 = vmor %vm905_vm2, %vm906_vm1 }
 0x273   : > { %v901_v12 = vmul.f32 %v1491_v10, %v900_v11 }
 0x275   : > { %v902_v13 = vmul.f32 0.5, %v901_v12 }
 0x277   : > { %v903_v15 = vsub.f32 1.5, %v902_v13 }
 0x279   : > { %v904_v17 = vmul.f32 %v1491_v10, %v903_v15 }
 0x27b   : > { %v908_v25 = vsel %vm907_vm3, %v1491_v10, %v904_v17 }
 0x27c   : > { %v909_v26 = vmul.f32 %v908_v25, %v884_v38  ;;  %v910_v27 = vmul.f32 %v908_v25, %v885_v62  ;;  %v911_v28 = vmul.f32 %v908_v25, %v886_v63  ;;  %v912_v29 = vmul.f32 %v908_v25, %v887_v39 }
 0x27e   : > { %v924_v31 = vmul.f32 %v916_v18, %v909_v26  ;;  %v925_v32 = vmul.f32 %v917_v19, %v910_v27  ;;  %v926_v33 = vmul.f32 %v918_v20, %v911_v28  ;;  %v927_v34 = vmul.f32 %v919_v21, %v912_v29 }
 0x280   : > { %v939_v35 = vadd.f32 %v931_v22, %v924_v31  ;;  %v940_v40 = vadd.f32 %v932_v23, %v925_v32  ;;  %v941_v41 = vadd.f32 %v933_v24, %v926_v33  ;;  %v942_v42 = vadd.f32 %v934_v30, %v927_v34 }
 0x282   : > { %943 = vst [vmem:[%s290_s25] sm:$0xff] %v939_v35 }
 0x283   : > { %944 = vst [vmem:[%s290_s25 + $0x8] sm:$0xff] %v940_v40 }
 0x284   : > { %945 = vst [vmem:[%s290_s25 + $0x10] sm:$0xff] %v941_v41 }
 0x285   : > { %946 = vst [vmem:[%s290_s25 + $0x18] sm:$0xff] %v942_v42 }
 0x286   : > { %1639 = shalt.err (!%p1636_p9)
}
 0x287   : > { %1419 = dma.vmem_to_hbm [thread:$0]  (%p1802_p13), %s962_s27, 512, %s964_s28, %s948_s10  }
 0x288 PF: > { %s975_s7 = sand.u32 1, %s1674_s18   ;;  %p1927_p10 = scmp.ge.s32.totalorder %s1686_s21, 2 }
 0x289   : > { %s976_s30 = scalar_lea.sflag [#allocation4], %s975_s7 }
 0x28a   : > { %p1436_p11 = pnand %p1927_p10, %p1807_p4 }
 0x28c   : > { %p1437_p0 = pneg %p1436_p11 }
 0x28e   : > { %1669 = dma.done.wait (%p1437_p0), %s976_s30, 512  }
 0x28f   : > { %1671 = vsyncadd (%p1437_p0), %s976_s30, 4294966784  ;;  %p20_p2 = scmp.ge.s32.totalorder %s1782_s24, 4   ;;  %s1928_s18 = smov %s1678_s19 }
 0x290   : > { %s1929_s19 = smov %s1682_s20  ;;  %s1930_s20 = smov %s1794_s29 }
 0x291   : > { %s1931_s21 = smov %s1782_s24  ;;  %22 = sbr.rel (!%p20_p2) target bundleno = 7 (0x7), region = 99 }
 0x296   :  { %982 = vsyncpa [#allocation3], 1 }
 0x297   :  { %984 = vsyncpa [#allocation3 + $0x1], 1 }
 0x298   :  { %985 = vsyncpa [#allocation6], 1 }
 0x299   :  { %986 = vsyncpa [#allocation9], 1 }
 0x29a   :  { %987 = vsyncpa [#allocation4], 1 }
 0x29b   :  { %989 = vsyncpa [#allocation4 + $0x1], 1 }

</bundles_post_ra>
